<compile_context>
chip_gen: v5e
topology: v5e:2x2
jax: 0.10.0
libtpu: 0.0.40
codegen_flags: <defaults>
</compile_context>

<pallas_src>
import functools

import jax
import jax.numpy as jnp
from jax.experimental import pallas as pl
from jax.experimental.pallas import tpu as pltpu


def _round_up(x, m):
    return ((x + m - 1) // m) * m


# ----------------------------------------------------------------------------
# Pallas kernel: one (channels, tm) pixel tile, all (folded) params resident.
# ----------------------------------------------------------------------------
def attention_gate_kernel(g_ref, x_ref, w_ref, b_ref, wpsi_ref, bpsi_ref, o_ref):
    # g_ref   : (F_g, tm)        VMEM   decoder gating features (channel-major)
    # x_ref   : (F_l, tm)        VMEM   encoder features (channel-major)
    # w_ref   : (F_int, F_g+F_l) VMEM   fused [Wg | Wx] with BN folded in
    # b_ref   : (F_int, 1)       VMEM   combined folded bias (bg + bx)
    # wpsi_ref: (F_int, 1)       VMEM   folded psi weights
    # bpsi_ref: (1,)             SMEM   folded psi bias (scalar)
    # o_ref   : (F_l, tm)        VMEM   gated encoder features
    F_g = g_ref.shape[0]
    F_l = x_ref.shape[0]
    F_int = w_ref.shape[0]
    tm = g_ref.shape[-1]

    g = g_ref[...]          # (F_g, tm)
    x = x_ref[...]          # (F_l, tm)
    w = w_ref[...]          # (F_int, F_g + F_l)

    # Fused W_g(g) + W_x(x) + bias, computed as VPU broadcast-FMAs
    # (channel counts are tiny, so the MXU would be almost entirely padding).
    h = jnp.broadcast_to(b_ref[...], (F_int, tm))
    for c in range(F_g):
        h = h + w[:, c:c + 1] * g[c:c + 1, :]
    for c in range(F_l):
        h = h + w[:, F_g + c:F_g + c + 1] * x[c:c + 1, :]

    # LeakyReLU(0.01)
    h = jnp.where(h > 0, h, 0.01 * h)

    # psi: 1-channel projection (folded BN) as a weighted sublane reduction,
    # then sigmoid.
    p = jnp.sum(wpsi_ref[...] * h, axis=0, keepdims=True) + bpsi_ref[0]   # (1, tm)
    psi = 1.0 / (1.0 + jnp.exp(-p))

    # Gate the encoder features.
    o_ref[...] = (x * psi).astype(o_ref.dtype)


# ----------------------------------------------------------------------------
# Wrapper: BN folding (glue) + pallas_call.
# ----------------------------------------------------------------------------
@functools.partial(jax.jit, static_argnames=("tm",))
def attention_gate(g_nchw, x_nchw, params, *, tm=1024):
    N, F_g, H, W = g_nchw.shape
    _, F_l, _, _ = x_nchw.shape
    eps = 1e-5

    # Fold inference BatchNorm into the 1x1 convs: y = (s*W).in + s*(b-mu)+beta
    def fold(w, b, gamma, beta, mean, var):
        w2 = w.reshape(w.shape[0], -1)                # (C_out, C_in) from (C_out, C_in, 1, 1)
        s = gamma / jnp.sqrt(var + eps)               # (C_out,)
        w_eff = w2 * s[:, None]                       # (C_out, C_in)  (channel-major)
        b_eff = (b - mean) * s + beta                 # (C_out,)
        return w_eff.astype(jnp.float32), b_eff.astype(jnp.float32)

    wg_eff, bg_eff = fold(params["wg"], params["bg"], params["bn_g_gamma"],
                          params["bn_g_beta"], params["bn_g_mean"], params["bn_g_var"])
    wx_eff, bx_eff = fold(params["wx"], params["bx"], params["bn_x_gamma"],
                          params["bn_x_beta"], params["bn_x_mean"], params["bn_x_var"])
    wpsi_eff, bpsi_eff = fold(params["wpsi"], params["bpsi"], params["bn_p_gamma"],
                              params["bn_p_beta"], params["bn_p_mean"], params["bn_p_var"])

    F_int = wg_eff.shape[0]
    w_comb = jnp.concatenate([wg_eff, wx_eff], axis=1)       # (F_int, F_g + F_l)
    b_comb = (bg_eff + bx_eff).reshape(F_int, 1)             # (F_int, 1)
    wpsi_col = wpsi_eff.reshape(F_int, 1)                    # (F_int, 1)
    bpsi_vec = bpsi_eff.reshape(1)                           # (1,)  -> SMEM scalar

    # Channel-major, no transposes: NCHW -> (N, C, H*W).
    HW = H * W
    tm_eff = max(128, min(_round_up(tm, 128), _round_up(HW, 128)))
    HW_pad = _round_up(HW, tm_eff)

    g3 = g_nchw.reshape(N, F_g, HW).astype(jnp.float32)
    x3 = x_nchw.reshape(N, F_l, HW).astype(jnp.float32)
    if HW_pad != HW:
        pad = ((0, 0), (0, 0), (0, HW_pad - HW))
        g3 = jnp.pad(g3, pad)
        x3 = jnp.pad(x3, pad)

    grid = (N, HW_pad // tm_eff)

    out3 = pl.pallas_call(
        attention_gate_kernel,
        out_shape=jax.ShapeDtypeStruct((N, F_l, HW_pad), x_nchw.dtype),
        grid_spec=pltpu.PrefetchScalarGridSpec(
            num_scalar_prefetch=0,
            grid=grid,
            in_specs=[
                pl.BlockSpec((None, F_g, tm_eff), lambda n, i: (n, 0, i)),   # g tile
                pl.BlockSpec((None, F_l, tm_eff), lambda n, i: (n, 0, i)),   # x tile
                pl.BlockSpec((F_int, F_g + F_l), lambda n, i: (0, 0)),       # fused W
                pl.BlockSpec((F_int, 1), lambda n, i: (0, 0)),               # fused bias
                pl.BlockSpec((F_int, 1), lambda n, i: (0, 0)),               # psi weights
                pl.BlockSpec(memory_space=pltpu.MemorySpace.SMEM),           # psi bias
            ],
            out_specs=pl.BlockSpec((None, F_l, tm_eff), lambda n, i: (n, 0, i)),
        ),
        compiler_params=pltpu.CompilerParams(
            dimension_semantics=("parallel", "parallel")),
    )(g3, x3, w_comb, b_comb, wpsi_col, bpsi_vec)

    if HW_pad != HW:
        out3 = out3[:, :, :HW]
    return out3.reshape(N, F_l, H, W)


# ----------------------------------------------------------------------------
# Plain-JAX reference (mirrors the PyTorch forward, eval-mode BN).
# ----------------------------------------------------------------------------
def attention_gate_ref(g_nchw, x_nchw, params):
    eps = 1e-5

    def conv1x1(t, w, b):  # t: NCHW, w: (C_out, C_in, 1, 1)
        w2 = w.reshape(w.shape[0], w.shape[1])
        y = jnp.einsum("nchw,oc->nohw", t, w2)
        return y + b[None, :, None, None]

    def bn(t, gamma, beta, mean, var):
        s = gamma / jnp.sqrt(var + eps)
        return t * s[None, :, None, None] + (beta - mean * s)[None, :, None, None]

    g1 = bn(conv1x1(g_nchw, params["wg"], params["bg"]),
            params["bn_g_gamma"], params["bn_g_beta"],
            params["bn_g_mean"], params["bn_g_var"])
    x1 = bn(conv1x1(x_nchw, params["wx"], params["bx"]),
            params["bn_x_gamma"], params["bn_x_beta"],
            params["bn_x_mean"], params["bn_x_var"])
    h = g1 + x1
    h = jnp.where(h > 0, h, 0.01 * h)
    p = bn(conv1x1(h, params["wpsi"], params["bpsi"]),
           params["bn_p_gamma"], params["bn_p_beta"],
           params["bn_p_mean"], params["bn_p_var"])
    psi = jax.nn.sigmoid(p)
    return x_nchw * psi


if __name__ == "__main__":
    # Small shapes: N=2, F_g=F_l=4, F_int=8, H=W=16
    N, F_g, F_l, F_int, H, W = 2, 4, 4, 8, 16, 16

    key = jax.random.PRNGKey(0)
    keys = jax.random.split(key, 12)

    params = {
        # PyTorch Conv2d 1x1 weights in native (C_out, C_in, 1, 1) layout
        "wg": jax.random.normal(keys[0], (F_int, F_g, 1, 1), jnp.float32) * 0.2,
        "bg": jax.random.normal(keys[1], (F_int,), jnp.float32) * 0.1,
        "wx": jax.random.normal(keys[2], (F_int, F_l, 1, 1), jnp.float32) * 0.2,
        "bx": jax.random.normal(keys[3], (F_int,), jnp.float32) * 0.1,
        "wpsi": jax.random.normal(keys[4], (1, F_int, 1, 1), jnp.float32) * 0.2,
        "bpsi": jax.random.normal(keys[5], (1,), jnp.float32) * 0.1,
        # deterministic (inference-mode) BatchNorm params
        "bn_g_gamma": 1.0 + 0.1 * jax.random.normal(keys[6], (F_int,), jnp.float32),
        "bn_g_beta": 0.05 * jax.random.normal(keys[7], (F_int,), jnp.float32),
        "bn_g_mean": 0.1 * jnp.arange(F_int, dtype=jnp.float32),
        "bn_g_var": 1.0 + 0.05 * jnp.arange(F_int, dtype=jnp.float32),
        "bn_x_gamma": 1.0 + 0.1 * jax.random.normal(keys[8], (F_int,), jnp.float32),
        "bn_x_beta": 0.05 * jax.random.normal(keys[9], (F_int,), jnp.float32),
        "bn_x_mean": 0.05 * jnp.arange(F_int, dtype=jnp.float32),
        "bn_x_var": 1.0 + 0.03 * jnp.arange(F_int, dtype=jnp.float32),
        "bn_p_gamma": jnp.array([1.1], jnp.float32),
        "bn_p_beta": jnp.array([0.02], jnp.float32),
        "bn_p_mean": jnp.array([0.05], jnp.float32),
        "bn_p_var": jnp.array([1.2], jnp.float32),
    }

    g_in = jax.random.normal(keys[10], (N, F_g, H, W), jnp.float32)
    x_in = jax.random.normal(keys[11], (N, F_l, H, W), jnp.float32)

    out = attention_gate(g_in, x_in, params)
    out = jax.block_until_ready(out)

    ref = attention_gate_ref(g_in, x_in, params)
    assert out.shape == (N, F_l, H, W)
    assert jnp.allclose(out, ref, atol=1e-5, rtol=1e-5), "mismatch vs reference"

    print("KERNEL_OK")
</pallas_src>

<mosaic_0001>
module attributes {stable_mosaic.version = 11 : i64} {
  func.func @attention_gate_kernel(%arg0: i32, %arg1: i32, %arg2: memref<1x4x256xf32, #tpu.memory_space<vmem>>, %arg3: memref<1x4x256xf32, #tpu.memory_space<vmem>>, %arg4: memref<8x8xf32, #tpu.memory_space<vmem>>, %arg5: memref<8x1xf32, #tpu.memory_space<vmem>>, %arg6: memref<8x1xf32, #tpu.memory_space<vmem>>, %arg7: memref<1xf32, #tpu.memory_space<smem>>, %arg8: memref<1x4x256xf32, #tpu.memory_space<vmem>>) attributes {dimension_semantics = [#tpu.dimension_semantics<parallel>, #tpu.dimension_semantics<parallel>], iteration_bounds = array<i64: 2, 1>, scalar_prefetch = 0 : i64, scratch_operands = 0 : i64, tpu.core_type = #tpu.core_type<tc>, window_params = [{transform_indices = @transform_0, window_bounds = array<i64: 1, 4, 256>}, {transform_indices = @transform_1, window_bounds = array<i64: 1, 4, 256>}, {pipeline_mode = #tpu.pipeline_mode<synchronous>, transform_indices = @transform_2, window_bounds = array<i64: 8, 8>}, {pipeline_mode = #tpu.pipeline_mode<synchronous>, transform_indices = @transform_3, window_bounds = array<i64: 8, 1>}, {pipeline_mode = #tpu.pipeline_mode<synchronous>, transform_indices = @transform_4, window_bounds = array<i64: 8, 1>}, {transform_indices = @transform_5, window_bounds = array<i64: 1>}, {transform_indices = @transform_6, window_bounds = array<i64: 1, 4, 256>}]} {
    %c0 = arith.constant 0 : index
    %c0_0 = arith.constant 0 : index
    %c0_1 = arith.constant 0 : index
    %0 = vector.load %arg2[%c0, %c0_0, %c0_1] : memref<1x4x256xf32, #tpu.memory_space<vmem>>, vector<1x4x256xf32>
    %1 = vector.shape_cast %0 : vector<1x4x256xf32> to vector<4x256xf32>
    %c0_2 = arith.constant 0 : index
    %c0_3 = arith.constant 0 : index
    %c0_4 = arith.constant 0 : index
    %2 = vector.load %arg3[%c0_2, %c0_3, %c0_4] : memref<1x4x256xf32, #tpu.memory_space<vmem>>, vector<1x4x256xf32>
    %3 = vector.shape_cast %2 : vector<1x4x256xf32> to vector<4x256xf32>
    %c0_5 = arith.constant 0 : index
    %c0_6 = arith.constant 0 : index
    %4 = vector.load %arg4[%c0_5, %c0_6] : memref<8x8xf32, #tpu.memory_space<vmem>>, vector<8x8xf32>
    %c0_7 = arith.constant 0 : index
    %c0_8 = arith.constant 0 : index
    %5 = vector.load %arg5[%c0_7, %c0_8] : memref<8x1xf32, #tpu.memory_space<vmem>>, vector<8x1xf32>
    %6 = vector.shape_cast %5 : vector<8x1xf32> to vector<8x1xf32>
    %7 = vector.broadcast %6 : vector<8x1xf32> to vector<8x256xf32>
    %8 = vector.extract_strided_slice %4 {offsets = [0, 0], sizes = [8, 1], strides = [1, 1]} : vector<8x8xf32> to vector<8x1xf32>
    %9 = vector.extract_strided_slice %1 {offsets = [0, 0], sizes = [1, 256], strides = [1, 1]} : vector<4x256xf32> to vector<1x256xf32>
    %10 = vector.broadcast %8 : vector<8x1xf32> to vector<8x256xf32>
    %11 = vector.broadcast %9 : vector<1x256xf32> to vector<8x256xf32>
    %12 = arith.mulf %10, %11 : vector<8x256xf32>
    %13 = arith.addf %7, %12 : vector<8x256xf32>
    %14 = vector.extract_strided_slice %4 {offsets = [0, 1], sizes = [8, 1], strides = [1, 1]} : vector<8x8xf32> to vector<8x1xf32>
    %15 = vector.extract_strided_slice %1 {offsets = [1, 0], sizes = [1, 256], strides = [1, 1]} : vector<4x256xf32> to vector<1x256xf32>
    %16 = vector.broadcast %14 : vector<8x1xf32> to vector<8x256xf32>
    %17 = vector.broadcast %15 : vector<1x256xf32> to vector<8x256xf32>
    %18 = arith.mulf %16, %17 : vector<8x256xf32>
    %19 = arith.addf %13, %18 : vector<8x256xf32>
    %20 = vector.extract_strided_slice %4 {offsets = [0, 2], sizes = [8, 1], strides = [1, 1]} : vector<8x8xf32> to vector<8x1xf32>
    %21 = vector.extract_strided_slice %1 {offsets = [2, 0], sizes = [1, 256], strides = [1, 1]} : vector<4x256xf32> to vector<1x256xf32>
    %22 = vector.broadcast %20 : vector<8x1xf32> to vector<8x256xf32>
    %23 = vector.broadcast %21 : vector<1x256xf32> to vector<8x256xf32>
    %24 = arith.mulf %22, %23 : vector<8x256xf32>
    %25 = arith.addf %19, %24 : vector<8x256xf32>
    %26 = vector.extract_strided_slice %4 {offsets = [0, 3], sizes = [8, 1], strides = [1, 1]} : vector<8x8xf32> to vector<8x1xf32>
    %27 = vector.extract_strided_slice %1 {offsets = [3, 0], sizes = [1, 256], strides = [1, 1]} : vector<4x256xf32> to vector<1x256xf32>
    %28 = vector.broadcast %26 : vector<8x1xf32> to vector<8x256xf32>
    %29 = vector.broadcast %27 : vector<1x256xf32> to vector<8x256xf32>
    %30 = arith.mulf %28, %29 : vector<8x256xf32>
    %31 = arith.addf %25, %30 : vector<8x256xf32>
    %32 = vector.extract_strided_slice %4 {offsets = [0, 4], sizes = [8, 1], strides = [1, 1]} : vector<8x8xf32> to vector<8x1xf32>
    %33 = vector.extract_strided_slice %3 {offsets = [0, 0], sizes = [1, 256], strides = [1, 1]} : vector<4x256xf32> to vector<1x256xf32>
    %34 = vector.broadcast %32 : vector<8x1xf32> to vector<8x256xf32>
    %35 = vector.broadcast %33 : vector<1x256xf32> to vector<8x256xf32>
    %36 = arith.mulf %34, %35 : vector<8x256xf32>
    %37 = arith.addf %31, %36 : vector<8x256xf32>
    %38 = vector.extract_strided_slice %4 {offsets = [0, 5], sizes = [8, 1], strides = [1, 1]} : vector<8x8xf32> to vector<8x1xf32>
    %39 = vector.extract_strided_slice %3 {offsets = [1, 0], sizes = [1, 256], strides = [1, 1]} : vector<4x256xf32> to vector<1x256xf32>
    %40 = vector.broadcast %38 : vector<8x1xf32> to vector<8x256xf32>
    %41 = vector.broadcast %39 : vector<1x256xf32> to vector<8x256xf32>
    %42 = arith.mulf %40, %41 : vector<8x256xf32>
    %43 = arith.addf %37, %42 : vector<8x256xf32>
    %44 = vector.extract_strided_slice %4 {offsets = [0, 6], sizes = [8, 1], strides = [1, 1]} : vector<8x8xf32> to vector<8x1xf32>
    %45 = vector.extract_strided_slice %3 {offsets = [2, 0], sizes = [1, 256], strides = [1, 1]} : vector<4x256xf32> to vector<1x256xf32>
    %46 = vector.broadcast %44 : vector<8x1xf32> to vector<8x256xf32>
    %47 = vector.broadcast %45 : vector<1x256xf32> to vector<8x256xf32>
    %48 = arith.mulf %46, %47 : vector<8x256xf32>
    %49 = arith.addf %43, %48 : vector<8x256xf32>
    %50 = vector.extract_strided_slice %4 {offsets = [0, 7], sizes = [8, 1], strides = [1, 1]} : vector<8x8xf32> to vector<8x1xf32>
    %51 = vector.extract_strided_slice %3 {offsets = [3, 0], sizes = [1, 256], strides = [1, 1]} : vector<4x256xf32> to vector<1x256xf32>
    %52 = vector.broadcast %50 : vector<8x1xf32> to vector<8x256xf32>
    %53 = vector.broadcast %51 : vector<1x256xf32> to vector<8x256xf32>
    %54 = arith.mulf %52, %53 : vector<8x256xf32>
    %55 = arith.addf %49, %54 : vector<8x256xf32>
    %cst = arith.constant 0.000000e+00 : f32
    %56 = vector.broadcast %cst : f32 to vector<8x256xf32>
    %57 = arith.cmpf ogt, %55, %56 : vector<8x256xf32>
    %cst_9 = arith.constant 0.00999999977 : f32
    %58 = vector.broadcast %cst_9 : f32 to vector<8x256xf32>
    %59 = arith.mulf %58, %55 : vector<8x256xf32>
    %60 = arith.select %57, %55, %59 : vector<8x256xi1>, vector<8x256xf32>
    %c0_10 = arith.constant 0 : index
    %c0_11 = arith.constant 0 : index
    %61 = vector.load %arg6[%c0_10, %c0_11] : memref<8x1xf32, #tpu.memory_space<vmem>>, vector<8x1xf32>
    %62 = vector.broadcast %61 : vector<8x1xf32> to vector<8x256xf32>
    %63 = arith.mulf %62, %60 : vector<8x256xf32>
    %cst_12 = arith.constant dense<0.000000e+00> : vector<256xf32>
    %64 = vector.multi_reduction <add>, %63, %cst_12 [0] : vector<8x256xf32> to vector<256xf32>
    %65 = vector.shape_cast %64 : vector<256xf32> to vector<1x256xf32>
    %c0_13 = arith.constant 0 : index
    %66 = memref.load %arg7[%c0_13] : memref<1xf32, #tpu.memory_space<smem>>
    %67 = vector.broadcast %66 : f32 to vector<1x256xf32>
    %68 = arith.addf %65, %67 : vector<1x256xf32>
    %cst_14 = arith.constant 0.000000e+00 : f32
    %69 = vector.broadcast %cst_14 : f32 to vector<1x256xf32>
    %70 = arith.subf %69, %68 : vector<1x256xf32>
    %71 = math.exp %70 : vector<1x256xf32>
    %cst_15 = arith.constant 1.000000e+00 : f32
    %72 = vector.broadcast %cst_15 : f32 to vector<1x256xf32>
    %73 = arith.addf %72, %71 : vector<1x256xf32>
    %cst_16 = arith.constant 1.000000e+00 : f32
    %74 = vector.broadcast %cst_16 : f32 to vector<1x256xf32>
    %75 = arith.divf %74, %73 : vector<1x256xf32>
    %76 = vector.broadcast %75 : vector<1x256xf32> to vector<4x256xf32>
    %77 = arith.mulf %3, %76 : vector<4x256xf32>
    %c0_17 = arith.constant 0 : index
    %c0_18 = arith.constant 0 : index
    %c0_19 = arith.constant 0 : index
    %78 = vector.load %arg8[%c0_17, %c0_18, %c0_19] : memref<1x4x256xf32, #tpu.memory_space<vmem>>, vector<1x4x256xf32>
    %79 = vector.shape_cast %78 : vector<1x4x256xf32> to vector<4x256xf32>
    %80 = vector.shape_cast %77 : vector<4x256xf32> to vector<1x4x256xf32>
    tpu.vector_store %arg8[%c0_17, %c0_18, %c0_19], %80 {strides = array<i32>} : memref<1x4x256xf32, #tpu.memory_space<vmem>>, vector<1x4x256xf32>,
    return
  }
  func.func @transform_0(%arg0: i32, %arg1: i32) -> (i32, i32, i32) {
    %c0_i32 = arith.constant 0 : i32
    %c0_i32_0 = arith.constant 0 : i32
    return %arg0, %c0_i32, %arg1 : i32, i32, i32
  }
  func.func @transform_1(%arg0: i32, %arg1: i32) -> (i32, i32, i32) {
    %c0_i32 = arith.constant 0 : i32
    %c0_i32_0 = arith.constant 0 : i32
    return %arg0, %c0_i32, %arg1 : i32, i32, i32
  }
  func.func @transform_2(%arg0: i32, %arg1: i32) -> (i32, i32) {
    %c0_i32 = arith.constant 0 : i32
    %c0_i32_0 = arith.constant 0 : i32
    %c0_i32_1 = arith.constant 0 : i32
    return %c0_i32, %c0_i32_0 : i32, i32
  }
  func.func @transform_3(%arg0: i32, %arg1: i32) -> (i32, i32) {
    %c0_i32 = arith.constant 0 : i32
    %c0_i32_0 = arith.constant 0 : i32
    %c0_i32_1 = arith.constant 0 : i32
    return %c0_i32, %c0_i32_0 : i32, i32
  }
  func.func @transform_4(%arg0: i32, %arg1: i32) -> (i32, i32) {
    %c0_i32 = arith.constant 0 : i32
    %c0_i32_0 = arith.constant 0 : i32
    %c0_i32_1 = arith.constant 0 : i32
    return %c0_i32, %c0_i32_0 : i32, i32
  }
  func.func @transform_5(%arg0: i32, %arg1: i32) -> i32 {
    %c0_i32 = arith.constant 0 : i32
    %c0_i32_0 = arith.constant 0 : i32
    return %c0_i32 : i32
  }
  func.func @transform_6(%arg0: i32, %arg1: i32) -> (i32, i32, i32) {
    %c0_i32 = arith.constant 0 : i32
    %c0_i32_0 = arith.constant 0 : i32
    return %arg0, %c0_i32, %arg1 : i32, i32, i32
  }
}

</mosaic_0001>

<bundles_post_ra>
// kernel: attention_gate.1
= control target key start
LH: loop header
LB: loop body
LE: loop exit
PB: predicated region body
PF: predicated region fallthrough
CT: control target
= control target key end

     0   :  { %s769_s23 = smov 0   ;;  %s771_s24 = smov 0   ;;  %s834_s0 = inlined_call_operand.vmem [shape: f32[2,4,256], index: 0, kind: input, shape index: {}]   ;;  %s835_s1 = inlined_call_operand.vmem [shape: f32[2,4,256], index: 1, kind: input, shape index: {}]   ;;  %s836_s2 = inlined_call_operand.vmem [shape: f32[8,8], index: 2, kind: input, shape index: {}]   ;;  %s837_s3 = inlined_call_operand.vmem [shape: f32[8,1], index: 3, kind: input, shape index: {}]   ;;  %s838_s4 = inlined_call_operand.vmem [shape: f32[8,1], index: 4, kind: input, shape index: {}]   ;;  %s839_s5 = inlined_call_operand.<no memory space> [shape: f32[1], index: 5, kind: input, shape index: {}]   ;;  %s840_s6 = inlined_call_operand.vmem [shape: f32[2,4,256], index: 6, kind: output, shape index: {}]  }
   0x1   :  { %11 = sst [smem:[#allocation2]] %s839_s5  ;;  %s773_s25 = smov 0  }
   0x2 LB: > { %s29_s5 = sadd.s32 1, %s717_s24  ;;  %p637_p0 = scmp.ge.s32.totalorder %s721_s25, 1  ;;  %s721_s25 = sphi %s773_s25, %s17_s25   ;;  %s717_s24 = sphi %s771_s24, %s842_s24   ;;  %s713_s23 = sphi %s769_s23, %s841_s23  }
   0x3   : > { %p31_p1 = scmp.ge.s32.totalorder %s29_s5, 2  ;;  %p251_p2 = scmp.lt.s32.totalorder %s721_s25, 3 }
   0x5   : > { %s844_s5 = smov (%p31_p1, %s29_s5), 0  ;;  %p252_p3 = pnand %p637_p0, %p251_p2 }
   0x6   : > { %p299_p4 = scmp.lt.s32.totalorder (!%p252_p3), %s713_s23, 1  ;;  %s478_s15 = sld [smem:[#allocation2]] (!%p252_p3) }
   0x7   : > { %255 = sbr.rel (%p252_p3) target bundleno = 210 (0xd2), region = 44 }
   0xc   : > { %v330_v0 = vld [vmem:[%s836_s2] sm:$0xff]  ;;  %v723_v1 = vmov 0   ;;  %v724_v2 = vmov 1   ;;  %v725_v3 = vmov 3   ;;  %v726_v5 = vmov 2   ;;  %s846_s23 = smov (!%p299_p4, %s713_s23), 1 }
   0xd   : > { %681 = vset.pattern.permute.xlu0 %v723_v1  ;;  %682 = vset.pattern.permute.xlu1 %v724_v2  ;;  %v331_v4 = vld [vmem:[%s837_s3] sm:$0xff]  ;;  %v727_v6 = vmov 4   ;;  %v728_v7 = vmov 5   ;;  %v729_v8 = vmov 6   ;;  %v730_v9 = vmov 7   ;;  %s800_s8 = sshll.u32 %s846_s23, 3 }
   0xe   : > { %339 = vperm.xlu0 %681, %v330_v0   ;;  %354 = vperm.xlu1 %682, %v330_v0   ;;  %v458_v10 = vld [vmem:[%s838_s4] sm:$0xff]  ;;  %s306_s11 = scalar_lea.vmem %s834_s0, %s800_s8  ;;  %s316_s14 = scalar_lea.vmem %s835_s1, %s800_s8  ;;  %vm523_vm9 = vcmask 1043456  }
   0xf   : > { %684 = vset.pattern.permute.xlu2 %v725_v3  ;;  %v328_v11 = vld [vmem:[%s306_s11] sm:$0xff]  ;;  %s326_s18 = scalar_lea.vmem %s840_s6, %s800_s8 }
  0x10   : > { %382 = vperm.xlu2 %684, %v330_v0   ;;  %v343_v13 = vperm.slane %v328_v11, 0  ;;  %v344_v14 = vperm.slane %v328_v11, 4  ;;  %v357_v17 = vperm.slane %v328_v11, 1  ;;  %v358_v18 = vperm.slane %v328_v11, 5  ;;  %v810_v25 = vld [vmem:[%s316_s14] sm:$0xff] }
  0x11   : > { %v371_v19 = vperm.slane %v328_v11, 2  ;;  %v372_v20 = vperm.slane %v328_v11, 6  ;;  %v385_v23 = vperm.slane %v328_v11, 3  ;;  %v386_v24 = vperm.slane %v328_v11, 7 }
  0x12   : > { %v347_v21 = vperm.slane %v343_v13, 0  ;;  %v348_v22 = vperm.slane %v344_v14, 0  ;;  %v361_v26 = vperm.slane %v357_v17, 1  ;;  %v362_v27 = vperm.slane %v358_v18, 1 }
  0x13   : > { %v375_v28 = vperm.slane %v371_v19, 2  ;;  %v376_v29 = vperm.slane %v372_v20, 2  ;;  %v400_v33 = vperm.slane %v810_v25, 0  ;;  %v401_v34 = vperm.slane %v810_v25, 4 }
  0x14   : > { %v389_v35 = vperm.slane %v385_v23, 3  ;;  %v390_v36 = vperm.slane %v386_v24, 3  ;;  %v414_v38 = vperm.slane %v810_v25, 1  ;;  %v415_v39 = vperm.slane %v810_v25, 5 }
  0x15   : > { %v428_v47 = vperm.slane %v810_v25, 2  ;;  %v429_v48 = vperm.slane %v810_v25, 6  ;;  %v404_v51 = vperm.slane %v400_v33, 0  ;;  %v405_v52 = vperm.slane %v401_v34, 0 }
  0x16   : > { %334 = vperm.xlu0 %681, %v331_v4   ;;  %683 = vset.pattern.permute.xlu1 %v726_v5  ;;  %v442_v53 = vperm.slane %v810_v25, 3  ;;  %v443_v54 = vperm.slane %v810_v25, 7  ;;  %v418_v59 = vperm.slane %v414_v38, 1  ;;  %v419_v60 = vperm.slane %v415_v39, 1 }
  0x17   : > { %368 = vperm.xlu1 %683, %v330_v0   ;;  %v432_v61 = vperm.slane %v428_v47, 2  ;;  %v433_v62 = vperm.slane %v429_v48, 2 }
  0x18   : > { %685 = vset.pattern.permute.xlu2 %v727_v6  ;;  %v446_v3 = vperm.slane %v442_v53, 3  ;;  %v447_v4 = vperm.slane %v443_v54, 3 }
  0x19   : > { %396 = vperm.xlu2 %685, %v330_v0  }
  0x1e   : > { %686 = vset.pattern.permute.xlu0 %v728_v7 }
  0x1f   : > { %411 = vperm.xlu0 %686, %v330_v0   ;;  %687 = vset.pattern.permute.xlu1 %v729_v8 }
  0x20   : > { %425 = vperm.xlu1 %687, %v330_v0  }
  0x21   : > { %688 = vset.pattern.permute.xlu2 %v730_v9 }
  0x22   : > { %439 = vperm.xlu2 %688, %v330_v0  }
  0x27   : > { %690 = vset.pattern.permute.xlu0 %v723_v1 }
  0x28   : > { %689 = vset.pattern.permute.xlu1 %v723_v1 }
  0x29   : > { %461 = vperm.xlu1 %689, %v458_v10  }
  0x6a   : > { %v383_v12 = vpop.permute.xlu2 %382 }
  0x6b   : > { %v391_v55 = vmul.f32 %v389_v35, %v383_v12  ;;  %v392_v56 = vmul.f32 %v390_v36, %v383_v12 }
  0x73   : > { %v397_v32 = vpop.permute.xlu2 %396 }
  0x74   : > { %v406_v1 = vmul.f32 %v404_v51, %v397_v32  ;;  %v407_v2 = vmul.f32 %v405_v52, %v397_v32 }
  0x7c   : > { %v440_v8 = vpop.permute.xlu2 %439 }
  0x7d   : > { %v449_v17 = vmul.f32 %v447_v4, %v440_v8 }
  0x80   : > { %v340_v15 = vpop.permute.xlu0 %339  ;;  %v355_v16 = vpop.permute.xlu1 %354 }
  0x81   : > { %v349_v30 = vmul.f32 %v347_v21, %v340_v15  ;;  %v350_v31 = vmul.f32 %v348_v22, %v340_v15  ;;  %v363_v40 = vmul.f32 %v361_v26, %v355_v16  ;;  %v364_v41 = vmul.f32 %v362_v27, %v355_v16 }
  0x82   : > { %v448_v16 = vmul.f32 %v446_v3, %v440_v8 }
  0x88   : > { %v335_v37 = vpop.permute.xlu0 %334 }
  0x89   : > { %v351_v42 = vadd.f32 %v349_v30, %v335_v37  ;;  %v352_v43 = vadd.f32 %v350_v31, %v335_v37  ;;  %v369_v44 = vpop.permute.xlu1 %368 }
  0x8a   : > { %v377_v45 = vmul.f32 %v375_v28, %v369_v44  ;;  %v378_v46 = vmul.f32 %v376_v29, %v369_v44 }
  0x8b   : > { %v365_v49 = vadd.f32 %v363_v40, %v351_v42  ;;  %v366_v50 = vadd.f32 %v364_v41, %v352_v43  ;;  %v479_v40 = vstv %s478_s15 }
  0x8d   : > { %v379_v57 = vadd.f32 %v377_v45, %v365_v49  ;;  %v380_v58 = vadd.f32 %v378_v46, %v366_v50 }
  0x8f   : > { %v393_v63 = vadd.f32 %v391_v55, %v379_v57  ;;  %v394_v0 = vadd.f32 %v392_v56, %v380_v58 }
  0x91   : > { %v408_v5 = vadd.f32 %v406_v1, %v393_v63  ;;  %v409_v6 = vadd.f32 %v407_v2, %v394_v0  ;;  %v412_v7 = vpop.permute.xlu0 %411 }
  0x92   : > { %v420_v9 = vmul.f32 %v418_v59, %v412_v7  ;;  %v421_v10 = vmul.f32 %v419_v60, %v412_v7  ;;  %v426_v11 = vpop.permute.xlu1 %425 }
  0x93   : > { %v434_v12 = vmul.f32 %v432_v61, %v426_v11  ;;  %v435_v13 = vmul.f32 %v433_v62, %v426_v11 }
  0x94   : > { %v422_v14 = vadd.f32 %v420_v9, %v408_v5  ;;  %v423_v15 = vadd.f32 %v421_v10, %v409_v6 }
  0x96   : > { %v436_v18 = vadd.f32 %v434_v12, %v422_v14  ;;  %v437_v19 = vadd.f32 %v435_v13, %v423_v15 }
  0x98   : > { %v450_v20 = vadd.f32 %v448_v16, %v436_v18  ;;  %v451_v21 = vadd.f32 %v449_v17, %v437_v19 }
  0x9a   : > { %vm452_vm0 = vcmp.gt.f32.partialorder %v450_v20, 0.0  ;;  %vm453_vm1 = vcmp.gt.f32.partialorder %v451_v21, 0.0  ;;  %v454_v22 = vmul.f32 0.01, %v450_v20  ;;  %v455_v23 = vmul.f32 0.01, %v451_v21 }
  0x9b   : > { %v462_v24 = vpop.permute.xlu1 %461 }
  0x9c   : > { %v456_v26 = vsel %vm452_vm0, %v450_v20, %v454_v22  ;;  %v457_v27 = vsel %vm453_vm1, %v451_v21, %v455_v23 }
  0x9d   : > { %v464_v28 = vmul.f32 %v462_v24, %v456_v26  ;;  %v465_v29 = vmul.f32 %v462_v24, %v457_v27 }
  0x9f   : > { %v466_v30 = vrot.slane %v464_v28, 4  ;;  %v472_v31 = vrot.slane %v465_v29, 4 }
  0xa1   : > { %v467_v32 = vadd.f32 %v466_v30, %v464_v28  ;;  %v473_v33 = vadd.f32 %v472_v31, %v465_v29 }
  0xa3   : > { %v468_v34 = vrot.slane %v467_v32, 2  ;;  %v474_v35 = vrot.slane %v473_v33, 2 }
  0xa5   : > { %v469_v36 = vadd.f32 %v468_v34, %v467_v32  ;;  %v475_v37 = vadd.f32 %v474_v35, %v473_v33 }
  0xa7   : > { %v470_v38 = vrot.slane %v469_v36, 1  ;;  %v476_v39 = vrot.slane %v475_v37, 1 }
  0xa9   : > { %v471_v41 = vadd.f32 %v470_v38, %v469_v36  ;;  %v477_v42 = vadd.f32 %v476_v39, %v475_v37 }
  0xab   : > { %v480_v43 = vadd.f32 %v479_v40, %v471_v41  ;;  %v481_v44 = vadd.f32 %v479_v40, %v477_v42 }
  0xad   : > { %v482_v45 = vsub.f32 0.0, %v480_v43  ;;  %v483_v46 = vsub.f32 0.0, %v481_v44 }
  0xaf   : > { %v484_v47 = vmul.f32 1.442695, %v482_v45  ;;  %v486_v48 = vmul.f32 1.442695, %v483_v46 }
  0xb1   : > { %691 = vpow2.f32 %v484_v47 }
  0xb2   : > { %693 = vpow2.f32 %v486_v48 }
  0xb7   : > { %v692_v49 = vpop.eup %691 }
  0xb8   : > { %v694_v50 = vpop.eup %693  ;;  %v488_v51 = vadd.f32 1.0, %v692_v49 }
  0xb9   : > { %v489_v52 = vadd.f32 1.0, %v694_v50 }
  0xba   : > { %695 = vrcp.f32 %v488_v51  ;;  %vm495_vm4 = vweird.f32 %v488_v51  ;;  %v501_v0 = vand.u32 2147483648, %v488_v51  ;;  %v499_v1 = vand.u32 2147483647, %v488_v51 }
  0xbb   : > { %697 = vrcp.f32 %v489_v52  ;;  %v516_v60 = vand.u32 2147483648, %v489_v52  ;;  %v514_v62 = vand.u32 2147483647, %v489_v52  ;;  %vm510_vm6 = vweird.f32 %v489_v52 }
  0xbc   : > { %v502_v6 = vor.u32 1.1754944e-38, %v501_v0  ;;  %vm500_vm10 = vcmp.eq.f32.partialorder %v499_v1, 8.507059e+37 }
  0xbd   : > { %v517_v3 = vor.u32 1.1754944e-38, %v516_v60  ;;  %vm515_vm8 = vcmp.eq.f32.partialorder %v514_v62, 8.507059e+37 }
  0xc0   : > { %v696_v53 = vpop.eup %695 }
  0xc1   : > { %v698_v54 = vpop.eup %697  ;;  %v491_v55 = vmul.f32 %v696_v53, %v488_v51  ;;  %vm496_vm2 = vweird.f32 %v696_v53 }
  0xc2   : > { %v506_v56 = vmul.f32 %v698_v54, %v489_v52  ;;  %vm511_vm3 = vweird.f32 %v698_v54  ;;  %vm497_vm5 = vmor %vm495_vm4, %vm496_vm2 }
  0xc3   : > { %v492_v57 = vsub.f32 1.0, %v491_v55  ;;  %vm512_vm7 = vmor %vm510_vm6, %vm511_vm3 }
  0xc4   : > { %v507_v58 = vsub.f32 1.0, %v506_v56 }
  0xc5   : > { %v493_v59 = vmul.f32 %v696_v53, %v492_v57 }
  0xc6   : > { %v508_v61 = vmul.f32 %v698_v54, %v507_v58 }
  0xc7   : > { %v494_v63 = vadd.f32 %v696_v53, %v493_v59 }
  0xc8   : > { %v509_v2 = vadd.f32 %v698_v54, %v508_v61 }
  0xc9   : > { %v498_v4 = vsel %vm497_vm5, %v696_v53, %v494_v63 }
  0xca   : > { %v513_v5 = vsel %vm512_vm7, %v698_v54, %v509_v2  ;;  %v503_v9 = vsel %vm500_vm10, %v502_v6, %v498_v4 }
  0xcb   : > { %v518_v7 = vsel %vm515_vm8, %v517_v3, %v513_v5 }
  0xcc   : > { %v522_v8 = vrot.slane %v518_v7, 4 }
  0xce   : > { %v524_v10 = vsel %vm523_vm9, %v503_v9, %v522_v8 }
  0xcf   : > { %v526_v11 = vmul.f32 %v524_v10, %v810_v25 }
  0xd1   : > { %527 = vst [vmem:[%s326_s18] sm:$0xff] %v526_v11 }
  0xd2 PF: > { %s17_s25 = sadd.s32 1, %s721_s25   ;;  %s841_s23 = smov %s717_s24 }
  0xd3   : > { %p14_p5 = scmp.ge.s32.totalorder %s17_s25, 4   ;;  %s842_s24 = smov %s844_s5 }
  0xd5   :  { %16 = sbr.rel (!%p14_p5) target bundleno = 2 (0x2), region = 77 }

</bundles_post_ra>
